<compile_context>
chip_gen: v6e
topology: v6e:2x2x1
jax: 0.10.0
libtpu: 0.0.40
codegen_flags: <defaults>
</compile_context>

<pallas_src>
import jax
import jax.numpy as jnp
from jax.experimental import pallas as pl
from jax.experimental.pallas import tpu as pltpu


def _round_up(x, m):
    return (x + m - 1) // m * m


def _pick_tile(padded_dim):
    # Prefer 256-wide tiles (fills the v6e/v7x 256x256 MXU) when they divide
    # the padded dim cleanly; otherwise 128 (v5e MXU width / min TPU tile).
    if padded_dim >= 256 and padded_dim % 256 == 0:
        return 256
    return 128


def _finetune_kernel(b_ref, w_ref, x_ref, o_ref, acc_ref):
    # b_ref:   (1, 1) f32 scalar bias in SMEM.
    # w_ref:   (tm, tk) compute-dtype W tile in VMEM.
    # x_ref:   (tk, tn) compute-dtype x tile in VMEM.
    # o_ref:   (tm, tn) output tile in VMEM.
    # acc_ref: (tm, tn) f32 accumulator scratch (persists across the K axis).
    k = pl.program_id(2)

    @pl.when(k == 0)
    def _():
        acc_ref[...] = jnp.zeros_like(acc_ref)

    acc_ref[...] += jnp.dot(
        w_ref[...], x_ref[...], preferred_element_type=jnp.float32
    )

    @pl.when(k == pl.num_programs(2) - 1)
    def _():
        # Bias is added once per output tile in the epilogue (VPU has slack),
        # keeping the inner K loop MXU-only.  Single store per output tile.
        o_ref[...] = (acc_ref[...] + b_ref[0, 0]).astype(o_ref.dtype)


def few_shot_finetuning_forward(W, x, b, *, compute_dtype=jnp.bfloat16,
                                out_dtype=jnp.float32):
    """Computes W @ x + b (scalar bias broadcast) with a tiled Pallas kernel."""
    M, K = W.shape
    K2, N = x.shape
    assert K == K2, "inner dims must match"

    # Pad every dim up to a TPU-friendly tile multiple.  Zero padding along K
    # adds nothing to the dot product; padded M/N rows/cols are sliced off.
    Mp, Np, Kp = _round_up(M, 128), _round_up(N, 128), _round_up(K, 128)
    tm, tn, tk = _pick_tile(Mp), _pick_tile(Np), _pick_tile(Kp)

    Wp = jnp.pad(W, ((0, Mp - M), (0, Kp - K))).astype(compute_dtype)
    xp = jnp.pad(x, ((0, Kp - K), (0, Np - N))).astype(compute_dtype)
    b_2d = jnp.reshape(b.astype(jnp.float32), (1, 1))

    grid = (Mp // tm, Np // tn, Kp // tk)

    cost = pl.CostEstimate(
        flops=2 * Mp * Np * Kp,
        transcendentals=0,
        bytes_accessed=(Wp.size * Wp.dtype.itemsize
                        + xp.size * xp.dtype.itemsize
                        + Mp * Np * jnp.dtype(out_dtype).itemsize),
    )

    out_padded = pl.pallas_call(
        _finetune_kernel,
        out_shape=jax.ShapeDtypeStruct((Mp, Np), out_dtype),
        grid_spec=pltpu.PrefetchScalarGridSpec(
            num_scalar_prefetch=0,
            grid=grid,
            in_specs=[
                pl.BlockSpec(memory_space=pltpu.MemorySpace.SMEM),  # bias
                pl.BlockSpec((tm, tk), lambda i, j, k: (i, k)),     # W tile
                pl.BlockSpec((tk, tn), lambda i, j, k: (k, j)),     # x tile
            ],
            out_specs=pl.BlockSpec((tm, tn), lambda i, j, k: (i, j)),
            scratch_shapes=[pltpu.VMEM((tm, tn), jnp.float32)],
        ),
        compiler_params=pltpu.CompilerParams(
            dimension_semantics=("parallel", "parallel", "arbitrary"),
        ),
        cost_estimate=cost,
    )(b_2d, Wp, xp)

    return out_padded[:M, :N]


if __name__ == "__main__":
    key = jax.random.PRNGKey(0)
    k_w, k_x = jax.random.split(key)

    # Small shapes consistent with the module: W (out_dim, in_dim),
    # x (in_dim, n_samples).
    out_dim, in_dim, n_samples = 32, 64, 128

    # Deterministic parameter init (what w_init / nn.Parameter would hold).
    W = jax.random.normal(k_w, (out_dim, in_dim), dtype=jnp.float32) * 0.02
    b = jnp.array([0.0], dtype=jnp.float32)  # torch.Tensor([0])
    x = jax.random.normal(k_x, (in_dim, n_samples), dtype=jnp.float32)

    out = few_shot_finetuning_forward(W, x, b)
    out = jax.block_until_ready(out)

    # Reference: same math with the same bf16-rounded operands, f32 accumulate
    # (matches the kernel's bf16-in / f32-acc MXU path).
    Wb = W.astype(jnp.bfloat16).astype(jnp.float32)
    xb = x.astype(jnp.bfloat16).astype(jnp.float32)
    ref = jnp.matmul(Wb, xb) + b[0]

    assert out.shape == (out_dim, n_samples)
    assert jnp.allclose(out, ref, atol=2e-3, rtol=2e-2), float(
        jnp.max(jnp.abs(out - ref))
    )

    # Loose sanity check against the full-f32 math as well.
    ref_f32 = jnp.matmul(W, x) + b[0]
    assert jnp.allclose(out, ref_f32, atol=5e-2, rtol=5e-2)

    print("KERNEL_OK")
</pallas_src>

<mosaic_0001>
module attributes {stable_mosaic.version = 11 : i64} {
  func.func @_finetune_kernel(%arg0: i32, %arg1: i32, %arg2: i32, %arg3: memref<1x1xf32, #tpu.memory_space<smem>>, %arg4: memref<128x128xbf16, #tpu.memory_space<vmem>>, %arg5: memref<128x128xbf16, #tpu.memory_space<vmem>>, %arg6: memref<128x128xf32, #tpu.memory_space<vmem>>, %arg7: memref<128x128xf32, #tpu.memory_space<vmem>>) attributes {dimension_semantics = [#tpu.dimension_semantics<parallel>, #tpu.dimension_semantics<parallel>, #tpu.dimension_semantics<arbitrary>], iteration_bounds = array<i64: 1, 1, 1>, scalar_prefetch = 0 : i64, scratch_operands = 1 : i64, tpu.core_type = #tpu.core_type<tc>, window_params = [{transform_indices = @transform_0, window_bounds = array<i64: 1, 1>}, {transform_indices = @transform_1, window_bounds = array<i64: 128, 128>}, {transform_indices = @transform_2, window_bounds = array<i64: 128, 128>}, {transform_indices = @transform_3, window_bounds = array<i64: 128, 128>}]} {
    %c0_i32 = arith.constant 0 : i32
    %0 = arith.cmpi eq, %arg2, %c0_i32 : i32
    %1 = arith.extui %0 : i1 to i32
    %c0_i32_0 = arith.constant 0 : i32
    %2 = arith.cmpi ne, %1, %c0_i32_0 : i32
    scf.if %2 {
      %cst_10 = arith.constant 0.000000e+00 : f32
      %12 = vector.broadcast %cst_10 : f32 to vector<128x128xf32>
      %c0_11 = arith.constant 0 : index
      %c0_12 = arith.constant 0 : index
      %13 = vector.load %arg7[%c0_11, %c0_12] : memref<128x128xf32, #tpu.memory_space<vmem>>, vector<128x128xf32>
      tpu.vector_store %arg7[%c0_11, %c0_12], %12 {strides = array<i32>} : memref<128x128xf32, #tpu.memory_space<vmem>>, vector<128x128xf32>,
    } else {
    }
    %c0 = arith.constant 0 : index
    %c0_1 = arith.constant 0 : index
    %3 = vector.load %arg7[%c0, %c0_1] : memref<128x128xf32, #tpu.memory_space<vmem>>, vector<128x128xf32>
    %c0_2 = arith.constant 0 : index
    %c0_3 = arith.constant 0 : index
    %4 = vector.load %arg4[%c0_2, %c0_3] : memref<128x128xbf16, #tpu.memory_space<vmem>>, vector<128x128xbf16>
    %c0_4 = arith.constant 0 : index
    %c0_5 = arith.constant 0 : index
    %5 = vector.load %arg5[%c0_4, %c0_5] : memref<128x128xbf16, #tpu.memory_space<vmem>>, vector<128x128xbf16>
    %cst = arith.constant dense<0.000000e+00> : vector<128x128xf32>
    %6 = tpu.matmul %4, %5, %cst {dimension_numbers = #tpu.dot_dimension_numbers<[1], [0], [0], [1], [0, 0, 1, 1], [], []>} : vector<128x128xbf16>, vector<128x128xbf16>, vector<128x128xf32> -> vector<128x128xf32>
    %7 = arith.addf %3, %6 : vector<128x128xf32>
    %c0_6 = arith.constant 0 : index
    %c0_7 = arith.constant 0 : index
    %8 = vector.load %arg7[%c0_6, %c0_7] : memref<128x128xf32, #tpu.memory_space<vmem>>, vector<128x128xf32>
    tpu.vector_store %arg7[%c0_6, %c0_7], %7 {strides = array<i32>} : memref<128x128xf32, #tpu.memory_space<vmem>>, vector<128x128xf32>,
    %c0_i32_8 = arith.constant 0 : i32
    %9 = arith.cmpi eq, %arg2, %c0_i32_8 : i32
    %10 = arith.extui %9 : i1 to i32
    %c0_i32_9 = arith.constant 0 : i32
    %11 = arith.cmpi ne, %10, %c0_i32_9 : i32
    scf.if %11 {
      %c0_10 = arith.constant 0 : index
      %c0_11 = arith.constant 0 : index
      %12 = vector.load %arg7[%c0_10, %c0_11] : memref<128x128xf32, #tpu.memory_space<vmem>>, vector<128x128xf32>
      %c0_12 = arith.constant 0 : index
      %c0_13 = arith.constant 0 : index
      %13 = memref.load %arg3[%c0_12, %c0_13] : memref<1x1xf32, #tpu.memory_space<smem>>
      %14 = vector.broadcast %13 : f32 to vector<128x128xf32>
      %15 = arith.addf %12, %14 : vector<128x128xf32>
      %c0_14 = arith.constant 0 : index
      %c0_15 = arith.constant 0 : index
      %16 = vector.load %arg6[%c0_14, %c0_15] : memref<128x128xf32, #tpu.memory_space<vmem>>, vector<128x128xf32>
      tpu.vector_store %arg6[%c0_14, %c0_15], %15 {strides = array<i32>} : memref<128x128xf32, #tpu.memory_space<vmem>>, vector<128x128xf32>,
    } else {
    }
    return
  }
  func.func @transform_0(%arg0: i32, %arg1: i32, %arg2: i32) -> (i32, i32) {
    %c0_i32 = arith.constant 0 : i32
    %c0_i32_0 = arith.constant 0 : i32
    %c0_i32_1 = arith.constant 0 : i32
    return %c0_i32, %c0_i32_0 : i32, i32
  }
  func.func @transform_1(%arg0: i32, %arg1: i32, %arg2: i32) -> (i32, i32) {
    %c0_i32 = arith.constant 0 : i32
    return %arg0, %arg2 : i32, i32
  }
  func.func @transform_2(%arg0: i32, %arg1: i32, %arg2: i32) -> (i32, i32) {
    %c0_i32 = arith.constant 0 : i32
    return %arg2, %arg1 : i32, i32
  }
  func.func @transform_3(%arg0: i32, %arg1: i32, %arg2: i32) -> (i32, i32) {
    %c0_i32 = arith.constant 0 : i32
    return %arg0, %arg1 : i32, i32
  }
}

</mosaic_0001>

<bundles_post_ra>
// kernel: tpu_custom_call.1
= control target key start
LH: loop header
LB: loop body
LE: loop exit
PB: predicated region body
PF: predicated region fallthrough
CT: control target
= control target key end

     0   :  { %9 = vsyncpa [#allocation5], 0  ;;  %s617_s0 = inlined_call_operand.<no memory space> [shape: f32[1,1], index: 0, kind: input, shape index: {}]   ;;  %s618_s1 = inlined_call_operand.hbm [shape: bf16[128,128], index: 1, kind: input, shape index: {}]   ;;  %s619_s2 = inlined_call_operand.hbm [shape: bf16[128,128], index: 2, kind: input, shape index: {}]   ;;  %s620_s3 = inlined_call_operand.hbm [shape: f32[128,128], index: 3, kind: output, shape index: {}]  }
   0x1   :  { %10 = vsyncpa [#allocation8], 0 }
   0x2   :  { %11 = vsyncpa [#allocation6], 0  ;;  %s578_s12 = smov [#allocation4]  }
   0x3   :  { %s19_s13 = sshll.u32 %s578_s12, 4  ;;  %s20_s13 = int_to_ptr.vmem [resolvable:$true] %s19_s13 }
   0x4   :  { %s520_s14 = scalar_lea.vmem %s20_s13, 1024  ;;  %p525_p1 = scmp.lt.s32.totalorder %s20_s13, %s20_s13 }
   0x5   :  { %p521_p0 = scmp.ne.s32.totalorder %s20_s13, %s520_s14  ;;  %p526_p2 = scmp.lt.s32.totalorder %s520_s14, %s520_s14 }
   0x7   :  { %p527_p3 = por %p526_p2, %p525_p1 }
   0x9   :  { %p528_p4 = pnand %p527_p3, %p521_p0 }
   0xb   :  { %531 = shalt.err (!%p528_p4)
}
   0xc   :  { %s579_s15 = smov 64   ;;  %s580_s16 = smov 4  }
   0xd   :  { %25 = dma.hbm_to_vmem [thread:$0]  %s618_s1, 1024, %s20_s13, [#allocation5], %s579_s15, %s579_s15, %s580_s16  }
   0xe   :  { %s581_s19 = smov [#allocation7]  }
   0xf   :  { %s31_s20 = sshll.u32 %s581_s19, 4  ;;  %s32_s20 = int_to_ptr.vmem [resolvable:$true] %s31_s20 }
  0x10   :  { %s540_s21 = scalar_lea.vmem %s32_s20, 1024  ;;  %p545_p6 = scmp.lt.s32.totalorder %s32_s20, %s32_s20 }
  0x11   :  { %p541_p5 = scmp.ne.s32.totalorder %s32_s20, %s540_s21  ;;  %p546_p7 = scmp.lt.s32.totalorder %s540_s21, %s540_s21 }
  0x13   :  { %p547_p8 = por %p546_p7, %p545_p6 }
  0x15   :  { %p548_p9 = pnand %p547_p8, %p541_p5 }
  0x17   :  { %551 = shalt.err (!%p548_p9)
}
  0x18   :  { %37 = dma.hbm_to_vmem [thread:$0]  %s619_s2, 1024, %s32_s20, [#allocation8], %s579_s15, %s579_s15, %s580_s16  }
  0x19   :  { %572 = dma.done.wait [#allocation5], 1024  }
  0x1a   :  { %573 = vsyncadd [#allocation5], 4294966272 }
  0x1b   :  { %574 = dma.done.wait [#allocation8], 1024  }
  0x1c   :  { %575 = vsyncadd [#allocation8], 4294966272  ;;  %v496_v0 = vld [vmem:[#allocation7 + $0x38] sm:$0xff]   ;;  %v497_v1 = vld [vmem:[#allocation7 + $0x30] sm:$0xff]   ;;  %v358_v16 = vstv %s617_s0  ;;  %s582_s0 = smov [#allocation9]  }
  0x1d   :  { %441 = vmatprep.subr.bf16.mxu0 %v496_v0  ;;  %473 = vmatprep.subr.bf16.mxu1 %v496_v0  ;;  %v498_v2 = vld [vmem:[#allocation7 + $0x28] sm:$0xff]   ;;  %v499_v3 = vld [vmem:[#allocation7 + $0x20] sm:$0xff]   ;;  %v500_v6 = vld [vmem:[#allocation7 + $0x18] sm:$0xff]   ;;  %s396_s24 = sshll.u32 %s582_s0, 4  ;;  %s397_s24 = int_to_ptr.vmem [resolvable:$true] %s396_s24 }
  0x1e   :  { %442 = vmatpush3.bf16.msra.mxu0 %v496_v0  ;;  %481 = vmatpush3.bf16.msra.mxu1 %v496_v0  ;;  %v504_v4 = vld [vmem:[#allocation4] sm:$0xff]   ;;  %v501_v7 = vld [vmem:[#allocation7 + $0x10] sm:$0xff]   ;;  %v502_v8 = vld [vmem:[#allocation7 + $0x8] sm:$0xff]   ;;  %s552_s25 = scalar_lea.vmem %s397_s24, 2048  ;;  %p557_p11 = scmp.lt.s32.totalorder %s397_s24, %s397_s24 }
  0x1f   :  { %443 = vmatprep.subr.bf16.mxu0 %v497_v1  ;;  %474 = vmatprep.subr.bf16.mxu1 %v497_v1  ;;  %v505_v5 = vld [vmem:[#allocation4 + $0x20] sm:$0xff]   ;;  %v506_v10 = vld [vmem:[#allocation4 + $0x8] sm:$0xff]   ;;  %v508_v12 = vld [vmem:[#allocation4 + $0x10] sm:$0xff]   ;;  %p553_p10 = scmp.ne.s32.totalorder %s397_s24, %s552_s25  ;;  %p558_p12 = scmp.lt.s32.totalorder %s552_s25, %s552_s25 }
  0x20   :  { %457 = vmatprep.mubr.bf16.mxu0 %v504_v4  ;;  %465 = vmatprep.mubr.bf16.mxu1 %v505_v5  ;;  %v503_v9 = vld [vmem:[#allocation7] sm:$0xff]   ;;  %v507_v11 = vld [vmem:[#allocation4 + $0x28] sm:$0xff]   ;;  %v509_v13 = vld [vmem:[#allocation4 + $0x30] sm:$0xff]  }
  0x21   :  { %v510_v14 = vld [vmem:[#allocation4 + $0x18] sm:$0xff]   ;;  %p559_p13 = por %p558_p12, %p557_p11 }
  0x22   :  { %444 = vmatpush3.bf16.msra.mxu0 %v497_v1  ;;  %482 = vmatpush3.bf16.msra.mxu1 %v497_v1  ;;  %v511_v15 = vld [vmem:[#allocation4 + $0x38] sm:$0xff]  }
  0x23   :  { %445 = vmatprep.subr.bf16.mxu0 %v498_v2  ;;  %475 = vmatprep.subr.bf16.mxu1 %v498_v2  ;;  %p560_p0 = pnand %p559_p13, %p553_p10 }
  0x26   :  { %446 = vmatpush3.bf16.msra.mxu0 %v498_v2  ;;  %483 = vmatpush3.bf16.msra.mxu1 %v498_v2 }
  0x27   :  { %447 = vmatprep.subr.bf16.mxu0 %v499_v3  ;;  %476 = vmatprep.subr.bf16.mxu1 %v499_v3 }
  0x2a   :  { %448 = vmatpush3.bf16.msra.mxu0 %v499_v3  ;;  %484 = vmatpush3.bf16.msra.mxu1 %v499_v3 }
  0x2b   :  { %449 = vmatprep.subr.bf16.mxu0 %v500_v6  ;;  %477 = vmatprep.subr.bf16.mxu1 %v500_v6 }
  0x2e   :  { %450 = vmatpush3.bf16.msra.mxu0 %v500_v6  ;;  %485 = vmatpush3.bf16.msra.mxu1 %v500_v6 }
  0x2f   :  { %451 = vmatprep.subr.bf16.mxu0 %v501_v7  ;;  %478 = vmatprep.subr.bf16.mxu1 %v501_v7 }
  0x32   :  { %452 = vmatpush3.bf16.msra.mxu0 %v501_v7  ;;  %486 = vmatpush3.bf16.msra.mxu1 %v501_v7 }
  0x33   :  { %453 = vmatprep.subr.bf16.mxu0 %v502_v8  ;;  %479 = vmatprep.subr.bf16.mxu1 %v502_v8 }
  0x36   :  { %454 = vmatpush3.bf16.msra.mxu0 %v502_v8  ;;  %487 = vmatpush3.bf16.msra.mxu1 %v502_v8 }
  0x37   :  { %455 = vmatprep.subr.bf16.mxu0 %v503_v9  ;;  %480 = vmatprep.subr.bf16.mxu1 %v503_v9 }
  0x3a   :  { %456 = vmatpush3.bf16.msra.mxu0 %v503_v9  ;;  %488 = vmatpush3.bf16.msra.mxu1 %v503_v9 }
  0x3d   :  { %458 = vmatmul.mubr.bf16.vlgmr.msra.gmra.mxu0 %v506_v10  ;;  %466 = vmatmul.mubr.bf16.vlgmr.msra.gmra.mxu1 %v507_v11 }
  0x3e   :  { %461 = vmatprep.mubr.bf16.mxu0 %v508_v12  ;;  %469 = vmatprep.mubr.bf16.mxu1 %v509_v13 }
  0x45   :  { %462 = vmatmul.mubr.bf16.gmra.mxu0 %v510_v14  ;;  %470 = vmatmul.mubr.bf16.gmra.mxu1 %v511_v15 }
  0xfd   :  { %v459_v17 = vpop.f32.mrf.mxu0  ;;  %v467_v18 = vpop.f32.mrf.mxu1 }
  0xfe   :  { %v361_v19 = vadd.f32 %v459_v17, %v358_v16  ;;  %v369_v20 = vadd.f32 %v467_v18, %v358_v16 }
  0xff   :  { %v243_v21 = vpop.f32.mrf.mxu0  ;;  %v275_v22 = vpop.f32.mrf.mxu1 }
 0x100   :  { %377 = vst [vmem:[#allocation9 + $0x10] sm:$0xff] %v361_v19  ;;  %385 = vst [vmem:[#allocation9 + $0x50] sm:$0xff] %v369_v20  ;;  %v359_v23 = vadd.f32 %v358_v16, %v243_v21  ;;  %v367_v24 = vadd.f32 %v358_v16, %v275_v22 }
 0x101   :  { %v460_v25 = vpop.f32.mrf.mxu0  ;;  %v468_v26 = vpop.f32.mrf.mxu1 }
 0x102   :  { %375 = vst [vmem:[#allocation9] sm:$0xff] %v359_v23  ;;  %383 = vst [vmem:[#allocation9 + $0x40] sm:$0xff] %v367_v24  ;;  %v362_v27 = vadd.f32 %v460_v25, %v358_v16  ;;  %v370_v28 = vadd.f32 %v468_v26, %v358_v16 }
 0x103   :  { %v246_v29 = vpop.f32.mrf.mxu0  ;;  %v278_v30 = vpop.f32.mrf.mxu1 }
 0x104   :  { %378 = vst [vmem:[#allocation9 + $0x18] sm:$0xff] %v362_v27  ;;  %386 = vst [vmem:[#allocation9 + $0x58] sm:$0xff] %v370_v28  ;;  %v360_v31 = vadd.f32 %v358_v16, %v246_v29  ;;  %v368_v32 = vadd.f32 %v358_v16, %v278_v30 }
 0x105   :  { %v463_v33 = vpop.f32.mrf.mxu0  ;;  %v471_v34 = vpop.f32.mrf.mxu1 }
 0x106   :  { %376 = vst [vmem:[#allocation9 + $0x8] sm:$0xff] %v360_v31  ;;  %384 = vst [vmem:[#allocation9 + $0x48] sm:$0xff] %v368_v32  ;;  %v365_v35 = vadd.f32 %v463_v33, %v358_v16  ;;  %v373_v36 = vadd.f32 %v471_v34, %v358_v16 }
 0x107   :  { %v259_v37 = vpop.f32.mrf.mxu0  ;;  %v291_v38 = vpop.f32.mrf.mxu1 }
 0x108   :  { %381 = vst [vmem:[#allocation9 + $0x30] sm:$0xff] %v365_v35  ;;  %389 = vst [vmem:[#allocation9 + $0x70] sm:$0xff] %v373_v36  ;;  %v363_v39 = vadd.f32 %v358_v16, %v259_v37  ;;  %v371_v40 = vadd.f32 %v358_v16, %v291_v38 }
 0x109   :  { %v464_v41 = vpop.f32.mrf.mxu0  ;;  %v472_v42 = vpop.f32.mrf.mxu1 }
 0x10a   :  { %379 = vst [vmem:[#allocation9 + $0x20] sm:$0xff] %v363_v39  ;;  %387 = vst [vmem:[#allocation9 + $0x60] sm:$0xff] %v371_v40  ;;  %v366_v43 = vadd.f32 %v464_v41, %v358_v16  ;;  %v374_v44 = vadd.f32 %v472_v42, %v358_v16 }
 0x10b   :  { %v262_v45 = vpop.f32.mrf.mxu0  ;;  %v294_v46 = vpop.f32.mrf.mxu1 }
 0x10c   :  { %382 = vst [vmem:[#allocation9 + $0x38] sm:$0xff] %v366_v43  ;;  %390 = vst [vmem:[#allocation9 + $0x78] sm:$0xff] %v374_v44  ;;  %v364_v47 = vadd.f32 %v358_v16, %v262_v45  ;;  %v372_v48 = vadd.f32 %v358_v16, %v294_v46 }
 0x10e   :  { %380 = vst [vmem:[#allocation9 + $0x28] sm:$0xff] %v364_v47  ;;  %388 = vst [vmem:[#allocation9 + $0x68] sm:$0xff] %v372_v48 }
 0x10f   :  { %563 = shalt.err (!%p560_p0)
}
 0x110   :  { %s583_s26 = smov 128   ;;  %s584_s27 = smov 8  }
 0x111   :  { %402 = dma.vmem_to_hbm [thread:$0]  %s397_s24, 2048, %s620_s3, [#allocation6], %s583_s26, %s583_s26, %s584_s27  }
 0x112   :  { %576 = dma.done.wait [#allocation6], 2048  }
 0x113   :  { %577 = vsyncadd [#allocation6], 4294965248 }
 0x114   :  { %406 = vsyncpa [#allocation5], 1 }
 0x115   :  { %407 = vsyncpa [#allocation8], 1 }
 0x116   :  { %408 = vsyncpa [#allocation6], 1 }

</bundles_post_ra>
